<compile_context>
chip_gen: v7x
topology: tpu7x:2x2x1
jax: 0.10.0
libtpu: 0.0.40
codegen_flags: <defaults>
</compile_context>

<pallas_src>
import functools

import jax
import jax.numpy as jnp
from jax import lax
from jax.experimental import pallas as pl
from jax.experimental.pallas import tpu as pltpu

INV_SQRT2 = 0.7071067811865476
LANE = 128      # f32 lane width
SUBLANE = 8     # f32 sublane width


def _round_up(x, m):
    return (x + m - 1) // m * m


def _fused_mlp_kernel(x_ref, w_ref, b_ref, o_ref, *, residual_flags):
    """Fused forward over all layers for one batch tile.

    x_ref: (TB, Dpad)            activation tile
    w_ref: (L, Dpad, Dpad)       all weights, zero-padded, resident in VMEM
    b_ref: (L, 1, Dpad)          all biases, zero-padded
    o_ref: (TB, Dpad)            output tile
    """
    h = x_ref[...]
    for li, residual in enumerate(residual_flags):       # statically unrolled (L=5)
        y = jnp.dot(h, w_ref[li], preferred_element_type=jnp.float32)
        y = y + b_ref[li]
        # exact GELU (matches torch.nn.GELU() default)
        y = 0.5 * y * (1.0 + lax.erf(y * INV_SQRT2))
        if residual:
            y = y + h
        h = y
    o_ref[...] = h


def fused_forward(x, params, layer_sizes, use_shortcut):
    """x: [B, layer_sizes[0]] f32; params: list of (w[in,out], b[out]) f32."""
    n_layers = len(layer_sizes) - 1
    d_pad = _round_up(max(layer_sizes), LANE)

    B = x.shape[0]
    b_pad = _round_up(B, SUBLANE)
    if b_pad > LANE:
        b_pad = _round_up(B, LANE)
        tb = LANE
    else:
        tb = b_pad

    # Zero-pad input (padded lanes/rows stay zero through every layer:
    # padded weight rows/cols and bias entries are zero, GELU(0)=0, 0+0=0).
    x_p = jnp.zeros((b_pad, d_pad), jnp.float32).at[:B, :layer_sizes[0]].set(x)

    w_stack = jnp.zeros((n_layers, d_pad, d_pad), jnp.float32)
    b_stack = jnp.zeros((n_layers, 1, d_pad), jnp.float32)
    for li, (w, b) in enumerate(params):
        din, dout = w.shape
        w_stack = w_stack.at[li, :din, :dout].set(w)
        b_stack = b_stack.at[li, 0, :dout].set(b)

    # Shortcut decision is static, based on the ORIGINAL (unpadded) layer widths.
    residual_flags = tuple(
        bool(use_shortcut) and layer_sizes[i] == layer_sizes[i + 1]
        for i in range(n_layers))

    kernel = functools.partial(_fused_mlp_kernel, residual_flags=residual_flags)

    out = pl.pallas_call(
        kernel,
        out_shape=jax.ShapeDtypeStruct((b_pad, d_pad), jnp.float32),
        grid=(b_pad // tb,),
        in_specs=[
            pl.BlockSpec((tb, d_pad), lambda i: (i, 0)),              # activations stream
            pl.BlockSpec((n_layers, d_pad, d_pad), lambda i: (0, 0, 0)),  # weights resident
            pl.BlockSpec((n_layers, 1, d_pad), lambda i: (0, 0, 0)),      # biases resident
        ],
        out_specs=pl.BlockSpec((tb, d_pad), lambda i: (i, 0)),
        compiler_params=pltpu.CompilerParams(
            dimension_semantics=("parallel",),
            vmem_limit_bytes=64 << 20),
    )(x_p, w_stack, b_stack)

    return out[:B, :layer_sizes[-1]]


def init_params(key, layer_sizes):
    """Deterministic init mimicking torch.nn.Linear default (uniform +-1/sqrt(fan_in)).
    Weights are stored already transposed: [in, out]."""
    params = []
    for li in range(len(layer_sizes) - 1):
        din, dout = layer_sizes[li], layer_sizes[li + 1]
        key, kw, kb = jax.random.split(key, 3)
        bound = 1.0 / jnp.sqrt(jnp.float32(din))
        w = jax.random.uniform(kw, (din, dout), jnp.float32, -bound, bound)
        b = jax.random.uniform(kb, (dout,), jnp.float32, -bound, bound)
        params.append((w, b))
    return params


def _reference_forward(x, params, use_shortcut):
    # pure-JAX reference matching ExampleDeepNeuralNetwork.forward
    for (w, b) in params:
        y = x @ w + b
        y = 0.5 * y * (1.0 + lax.erf(y * INV_SQRT2))
        if use_shortcut and x.shape == y.shape:
            x = x + y
        else:
            x = y
    return x


if __name__ == "__main__":
    # Small shapes consistent with the module: 6 layer sizes -> 5 Linear layers.
    # First 5 sizes equal so shortcuts fire; final layer changes width (no shortcut).
    layer_sizes = [32, 32, 32, 32, 32, 16]
    use_shortcut = True
    batch = 8

    key = jax.random.PRNGKey(0)
    kx, kp = jax.random.split(key)
    x = jax.random.normal(kx, (batch, layer_sizes[0]), jnp.float32)
    params = init_params(kp, layer_sizes)

    out = fused_forward(x, params, layer_sizes, use_shortcut)
    out = jax.block_until_ready(out)

    ref = _reference_forward(x, params, use_shortcut)
    assert out.shape == (batch, layer_sizes[-1])
    assert jnp.allclose(out, ref, atol=1e-5, rtol=1e-5)

    print("KERNEL_OK")
</pallas_src>

<mosaic_0001>
module attributes {stable_mosaic.version = 11 : i64} {
  func.func @_fused_mlp_kernel(%arg0: i32, %arg1: memref<8x128xf32, #tpu.memory_space<vmem>>, %arg2: memref<5x128x128xf32, #tpu.memory_space<vmem>>, %arg3: memref<5x1x128xf32, #tpu.memory_space<vmem>>, %arg4: memref<8x128xf32, #tpu.memory_space<vmem>>) attributes {dimension_semantics = [#tpu.dimension_semantics<parallel>], iteration_bounds = array<i64: 1>, scalar_prefetch = 0 : i64, scratch_operands = 0 : i64, tpu.core_type = #tpu.core_type<tc>, window_params = [{transform_indices = @transform_0, window_bounds = array<i64: 8, 128>}, {pipeline_mode = #tpu.pipeline_mode<synchronous>, transform_indices = @transform_1, window_bounds = array<i64: 5, 128, 128>}, {pipeline_mode = #tpu.pipeline_mode<synchronous>, transform_indices = @transform_2, window_bounds = array<i64: 5, 1, 128>}, {transform_indices = @transform_3, window_bounds = array<i64: 8, 128>}]} {
    %c0 = arith.constant 0 : index
    %c0_0 = arith.constant 0 : index
    %0 = vector.load %arg1[%c0, %c0_0] : memref<8x128xf32, #tpu.memory_space<vmem>>, vector<8x128xf32>
    %c0_1 = arith.constant 0 : index
    %c0_2 = arith.constant 0 : index
    %c0_3 = arith.constant 0 : index
    %1 = vector.load %arg2[%c0_1, %c0_2, %c0_3] : memref<5x128x128xf32, #tpu.memory_space<vmem>>, vector<1x128x128xf32>
    %2 = vector.shape_cast %1 : vector<1x128x128xf32> to vector<128x128xf32>
    %cst = arith.constant dense<0.000000e+00> : vector<8x128xf32>
    %3 = tpu.matmul %0, %2, %cst {dimension_numbers = #tpu.dot_dimension_numbers<[1], [0], [0], [1], [0, 0, 1, 1], [], []>} : vector<8x128xf32>, vector<128x128xf32>, vector<8x128xf32> -> vector<8x128xf32>
    %c0_4 = arith.constant 0 : index
    %c0_5 = arith.constant 0 : index
    %c0_6 = arith.constant 0 : index
    %4 = vector.load %arg3[%c0_4, %c0_5, %c0_6] : memref<5x1x128xf32, #tpu.memory_space<vmem>>, vector<1x1x128xf32>
    %5 = vector.shape_cast %4 : vector<1x1x128xf32> to vector<1x128xf32>
    %6 = vector.broadcast %5 : vector<1x128xf32> to vector<8x128xf32>
    %7 = arith.addf %3, %6 : vector<8x128xf32>
    %cst_7 = arith.constant 5.000000e-01 : f32
    %8 = vector.broadcast %cst_7 : f32 to vector<8x128xf32>
    %9 = arith.mulf %8, %7 : vector<8x128xf32>
    %cst_8 = arith.constant 0.707106769 : f32
    %10 = vector.broadcast %cst_8 : f32 to vector<8x128xf32>
    %11 = arith.mulf %7, %10 : vector<8x128xf32>
    %12 = math.erf %11 : vector<8x128xf32>
    %cst_9 = arith.constant 1.000000e+00 : f32
    %13 = vector.broadcast %cst_9 : f32 to vector<8x128xf32>
    %14 = arith.addf %13, %12 : vector<8x128xf32>
    %15 = arith.mulf %9, %14 : vector<8x128xf32>
    %16 = arith.addf %15, %0 : vector<8x128xf32>
    %c1 = arith.constant 1 : index
    %c0_10 = arith.constant 0 : index
    %c0_11 = arith.constant 0 : index
    %17 = vector.load %arg2[%c1, %c0_10, %c0_11] : memref<5x128x128xf32, #tpu.memory_space<vmem>>, vector<1x128x128xf32>
    %18 = vector.shape_cast %17 : vector<1x128x128xf32> to vector<128x128xf32>
    %cst_12 = arith.constant dense<0.000000e+00> : vector<8x128xf32>
    %19 = tpu.matmul %16, %18, %cst_12 {dimension_numbers = #tpu.dot_dimension_numbers<[1], [0], [0], [1], [0, 0, 1, 1], [], []>} : vector<8x128xf32>, vector<128x128xf32>, vector<8x128xf32> -> vector<8x128xf32>
    %c1_13 = arith.constant 1 : index
    %c0_14 = arith.constant 0 : index
    %c0_15 = arith.constant 0 : index
    %20 = vector.load %arg3[%c1_13, %c0_14, %c0_15] : memref<5x1x128xf32, #tpu.memory_space<vmem>>, vector<1x1x128xf32>
    %21 = vector.shape_cast %20 : vector<1x1x128xf32> to vector<1x128xf32>
    %22 = vector.broadcast %21 : vector<1x128xf32> to vector<8x128xf32>
    %23 = arith.addf %19, %22 : vector<8x128xf32>
    %cst_16 = arith.constant 5.000000e-01 : f32
    %24 = vector.broadcast %cst_16 : f32 to vector<8x128xf32>
    %25 = arith.mulf %24, %23 : vector<8x128xf32>
    %cst_17 = arith.constant 0.707106769 : f32
    %26 = vector.broadcast %cst_17 : f32 to vector<8x128xf32>
    %27 = arith.mulf %23, %26 : vector<8x128xf32>
    %28 = math.erf %27 : vector<8x128xf32>
    %cst_18 = arith.constant 1.000000e+00 : f32
    %29 = vector.broadcast %cst_18 : f32 to vector<8x128xf32>
    %30 = arith.addf %29, %28 : vector<8x128xf32>
    %31 = arith.mulf %25, %30 : vector<8x128xf32>
    %32 = arith.addf %31, %16 : vector<8x128xf32>
    %c2 = arith.constant 2 : index
    %c0_19 = arith.constant 0 : index
    %c0_20 = arith.constant 0 : index
    %33 = vector.load %arg2[%c2, %c0_19, %c0_20] : memref<5x128x128xf32, #tpu.memory_space<vmem>>, vector<1x128x128xf32>
    %34 = vector.shape_cast %33 : vector<1x128x128xf32> to vector<128x128xf32>
    %cst_21 = arith.constant dense<0.000000e+00> : vector<8x128xf32>
    %35 = tpu.matmul %32, %34, %cst_21 {dimension_numbers = #tpu.dot_dimension_numbers<[1], [0], [0], [1], [0, 0, 1, 1], [], []>} : vector<8x128xf32>, vector<128x128xf32>, vector<8x128xf32> -> vector<8x128xf32>
    %c2_22 = arith.constant 2 : index
    %c0_23 = arith.constant 0 : index
    %c0_24 = arith.constant 0 : index
    %36 = vector.load %arg3[%c2_22, %c0_23, %c0_24] : memref<5x1x128xf32, #tpu.memory_space<vmem>>, vector<1x1x128xf32>
    %37 = vector.shape_cast %36 : vector<1x1x128xf32> to vector<1x128xf32>
    %38 = vector.broadcast %37 : vector<1x128xf32> to vector<8x128xf32>
    %39 = arith.addf %35, %38 : vector<8x128xf32>
    %cst_25 = arith.constant 5.000000e-01 : f32
    %40 = vector.broadcast %cst_25 : f32 to vector<8x128xf32>
    %41 = arith.mulf %40, %39 : vector<8x128xf32>
    %cst_26 = arith.constant 0.707106769 : f32
    %42 = vector.broadcast %cst_26 : f32 to vector<8x128xf32>
    %43 = arith.mulf %39, %42 : vector<8x128xf32>
    %44 = math.erf %43 : vector<8x128xf32>
    %cst_27 = arith.constant 1.000000e+00 : f32
    %45 = vector.broadcast %cst_27 : f32 to vector<8x128xf32>
    %46 = arith.addf %45, %44 : vector<8x128xf32>
    %47 = arith.mulf %41, %46 : vector<8x128xf32>
    %48 = arith.addf %47, %32 : vector<8x128xf32>
    %c3 = arith.constant 3 : index
    %c0_28 = arith.constant 0 : index
    %c0_29 = arith.constant 0 : index
    %49 = vector.load %arg2[%c3, %c0_28, %c0_29] : memref<5x128x128xf32, #tpu.memory_space<vmem>>, vector<1x128x128xf32>
    %50 = vector.shape_cast %49 : vector<1x128x128xf32> to vector<128x128xf32>
    %cst_30 = arith.constant dense<0.000000e+00> : vector<8x128xf32>
    %51 = tpu.matmul %48, %50, %cst_30 {dimension_numbers = #tpu.dot_dimension_numbers<[1], [0], [0], [1], [0, 0, 1, 1], [], []>} : vector<8x128xf32>, vector<128x128xf32>, vector<8x128xf32> -> vector<8x128xf32>
    %c3_31 = arith.constant 3 : index
    %c0_32 = arith.constant 0 : index
    %c0_33 = arith.constant 0 : index
    %52 = vector.load %arg3[%c3_31, %c0_32, %c0_33] : memref<5x1x128xf32, #tpu.memory_space<vmem>>, vector<1x1x128xf32>
    %53 = vector.shape_cast %52 : vector<1x1x128xf32> to vector<1x128xf32>
    %54 = vector.broadcast %53 : vector<1x128xf32> to vector<8x128xf32>
    %55 = arith.addf %51, %54 : vector<8x128xf32>
    %cst_34 = arith.constant 5.000000e-01 : f32
    %56 = vector.broadcast %cst_34 : f32 to vector<8x128xf32>
    %57 = arith.mulf %56, %55 : vector<8x128xf32>
    %cst_35 = arith.constant 0.707106769 : f32
    %58 = vector.broadcast %cst_35 : f32 to vector<8x128xf32>
    %59 = arith.mulf %55, %58 : vector<8x128xf32>
    %60 = math.erf %59 : vector<8x128xf32>
    %cst_36 = arith.constant 1.000000e+00 : f32
    %61 = vector.broadcast %cst_36 : f32 to vector<8x128xf32>
    %62 = arith.addf %61, %60 : vector<8x128xf32>
    %63 = arith.mulf %57, %62 : vector<8x128xf32>
    %64 = arith.addf %63, %48 : vector<8x128xf32>
    %c4 = arith.constant 4 : index
    %c0_37 = arith.constant 0 : index
    %c0_38 = arith.constant 0 : index
    %65 = vector.load %arg2[%c4, %c0_37, %c0_38] : memref<5x128x128xf32, #tpu.memory_space<vmem>>, vector<1x128x128xf32>
    %66 = vector.shape_cast %65 : vector<1x128x128xf32> to vector<128x128xf32>
    %cst_39 = arith.constant dense<0.000000e+00> : vector<8x128xf32>
    %67 = tpu.matmul %64, %66, %cst_39 {dimension_numbers = #tpu.dot_dimension_numbers<[1], [0], [0], [1], [0, 0, 1, 1], [], []>} : vector<8x128xf32>, vector<128x128xf32>, vector<8x128xf32> -> vector<8x128xf32>
    %c4_40 = arith.constant 4 : index
    %c0_41 = arith.constant 0 : index
    %c0_42 = arith.constant 0 : index
    %68 = vector.load %arg3[%c4_40, %c0_41, %c0_42] : memref<5x1x128xf32, #tpu.memory_space<vmem>>, vector<1x1x128xf32>
    %69 = vector.shape_cast %68 : vector<1x1x128xf32> to vector<1x128xf32>
    %70 = vector.broadcast %69 : vector<1x128xf32> to vector<8x128xf32>
    %71 = arith.addf %67, %70 : vector<8x128xf32>
    %cst_43 = arith.constant 5.000000e-01 : f32
    %72 = vector.broadcast %cst_43 : f32 to vector<8x128xf32>
    %73 = arith.mulf %72, %71 : vector<8x128xf32>
    %cst_44 = arith.constant 0.707106769 : f32
    %74 = vector.broadcast %cst_44 : f32 to vector<8x128xf32>
    %75 = arith.mulf %71, %74 : vector<8x128xf32>
    %76 = math.erf %75 : vector<8x128xf32>
    %cst_45 = arith.constant 1.000000e+00 : f32
    %77 = vector.broadcast %cst_45 : f32 to vector<8x128xf32>
    %78 = arith.addf %77, %76 : vector<8x128xf32>
    %79 = arith.mulf %73, %78 : vector<8x128xf32>
    %c0_46 = arith.constant 0 : index
    %c0_47 = arith.constant 0 : index
    %80 = vector.load %arg4[%c0_46, %c0_47] : memref<8x128xf32, #tpu.memory_space<vmem>>, vector<8x128xf32>
    tpu.vector_store %arg4[%c0_46, %c0_47], %79 {strides = array<i32>} : memref<8x128xf32, #tpu.memory_space<vmem>>, vector<8x128xf32>,
    return
  }
  func.func @transform_0(%arg0: i32) -> (i32, i32) {
    %c0_i32 = arith.constant 0 : i32
    %c0_i32_0 = arith.constant 0 : i32
    return %arg0, %c0_i32 : i32, i32
  }
  func.func @transform_1(%arg0: i32) -> (i32, i32, i32) {
    %c0_i32 = arith.constant 0 : i32
    %c0_i32_0 = arith.constant 0 : i32
    %c0_i32_1 = arith.constant 0 : i32
    %c0_i32_2 = arith.constant 0 : i32
    return %c0_i32, %c0_i32_0, %c0_i32_1 : i32, i32, i32
  }
  func.func @transform_2(%arg0: i32) -> (i32, i32, i32) {
    %c0_i32 = arith.constant 0 : i32
    %c0_i32_0 = arith.constant 0 : i32
    %c0_i32_1 = arith.constant 0 : i32
    %c0_i32_2 = arith.constant 0 : i32
    return %c0_i32, %c0_i32_0, %c0_i32_1 : i32, i32, i32
  }
  func.func @transform_3(%arg0: i32) -> (i32, i32) {
    %c0_i32 = arith.constant 0 : i32
    %c0_i32_0 = arith.constant 0 : i32
    return %arg0, %c0_i32 : i32, i32
  }
}

</mosaic_0001>

<bundles_post_ra>
// kernel: tpu_custom_call.1
= control target key start
LH: loop header
LB: loop body
LE: loop exit
PB: predicated region body
PF: predicated region fallthrough
CT: control target
= control target key end

     0   :  { %8 = vsyncpa [#allocation3], 0  ;;  %s1203_s0 = inlined_call_operand.hbm [shape: f32[8,128], index: 0, kind: input, shape index: {}]   ;;  %s1204_s1 = inlined_call_operand.hbm [shape: f32[5,128,128], index: 1, kind: input, shape index: {}]   ;;  %s1205_s2 = inlined_call_operand.hbm [shape: f32[5,1,128], index: 2, kind: input, shape index: {}]   ;;  %s1206_s3 = inlined_call_operand.hbm [shape: f32[8,128], index: 3, kind: output, shape index: {}]  }
   0x1   :  { %9 = vsyncpa [#allocation6], 0 }
   0x2   :  { %10 = vsyncpa [#allocation4], 0  ;;  %s1074_s12 = smov [#allocation5]   ;;  %s980_s16 = scalar_lea.hbm %s1204_s1, 10240 }
   0x3   :  { %s26_s13 = sshll.u32 %s1074_s12, 4  ;;  %p981_p0 = scmp.ne.s32.totalorder %s1204_s1, %s980_s16  ;;  %s27_s13 = int_to_ptr.vmem [resolvable:$true] %s26_s13 }
   0x4   :  { %p984_p1 = scmp.lt.u32.totalorder %s980_s16, %s1204_s1 }
   0x6   :  { %p986_p2 = pnand %p984_p1, %p981_p0 }
   0x8   :  { %989 = shalt.err (!%p986_p2)
}
   0x9   :  { %s990_s21 = scalar_lea.vmem %s27_s13, 10240  ;;  %p995_p4 = scmp.lt.s32.totalorder %s27_s13, %s27_s13 }
   0xa   :  { %p991_p3 = scmp.ne.s32.totalorder %s27_s13, %s990_s21  ;;  %p996_p5 = scmp.lt.s32.totalorder %s990_s21, %s990_s21 }
   0xc   :  { %p997_p6 = por %p996_p5, %p995_p4 }
   0xe   :  { %p998_p7 = pnand %p997_p6, %p991_p3 }
  0x10   :  { %1001 = shalt.err (!%p998_p7)
}
  0x11   :  { %s1075_s22 = smov 128   ;;  %s1076_s23 = smov 8  }
  0x12   :  { %32 = dma.hbm_to_vmem [thread:$0]  %s1204_s1, 10240, %s27_s13, [#allocation6], %s1075_s22, %s1075_s22, %s1076_s23  }
  0x13   :  { %s1077_s26 = smov [#allocation2]   ;;  %s1078_s28 = smov [#allocation7]  }
  0x14   :  { %s17_s27 = sshll.u32 %s1077_s26, 4  ;;  %s38_s29 = sshll.u32 %s1078_s28, 4  ;;  %s18_s27 = int_to_ptr.vmem [resolvable:$true] %s17_s27  ;;  %s39_s29 = int_to_ptr.vmem [resolvable:$true] %s38_s29 }
  0x15   :  { %s1002_s5 = scalar_lea.hbm %s1203_s0, 128 }
  0x16   :  { %p1003_p8 = scmp.ne.s32.totalorder %s1203_s0, %s1002_s5  ;;  %p1006_p9 = scmp.lt.u32.totalorder %s1002_s5, %s1203_s0 }
  0x18   :  { %p1008_p10 = pnand %p1006_p9, %p1003_p8 }
  0x1a   :  { %1011 = shalt.err (!%p1008_p10)
}
  0x1b   :  { %s1012_s1 = scalar_lea.vmem %s18_s27, 128  ;;  %p1017_p12 = scmp.lt.s32.totalorder %s18_s27, %s18_s27 }
  0x1c   :  { %p1013_p11 = scmp.ne.s32.totalorder %s18_s27, %s1012_s1  ;;  %p1018_p13 = scmp.lt.s32.totalorder %s1012_s1, %s1012_s1 }
  0x1e   :  { %p1019_p0 = por %p1018_p13, %p1017_p12 }
  0x20   :  { %p1020_p1 = pnand %p1019_p0, %p1013_p11 }
  0x22   :  { %1023 = shalt.err (!%p1020_p1)
}
  0x23   :  { %20 = dma.hbm_to_vmem [thread:$0]  %s1203_s0, 128, %s18_s27, [#allocation3]  }
  0x24   :  { %s1024_s14 = scalar_lea.hbm %s1205_s2, 80 }
  0x25   :  { %p1025_p2 = scmp.ne.s32.totalorder %s1205_s2, %s1024_s14  ;;  %p1028_p3 = scmp.lt.u32.totalorder %s1024_s14, %s1205_s2 }
  0x27   :  { %p1030_p4 = pnand %p1028_p3, %p1025_p2 }
  0x29   :  { %1033 = shalt.err (!%p1030_p4)
}
  0x2a   :  { %s1034_s19 = scalar_lea.vmem %s39_s29, 80  ;;  %s1038_s20 = scalar_lea.vmem %s39_s29, 96 }
  0x2b   :  { %p1035_p5 = scmp.ne.s32.totalorder %s39_s29, %s1034_s19  ;;  %p1039_p6 = scmp.lt.s32.totalorder %s39_s29, %s39_s29 }
  0x2c   :  { %p1040_p7 = scmp.lt.s32.totalorder %s1038_s20, %s1034_s19 }
  0x2e   :  { %p1041_p8 = por %p1040_p7, %p1039_p6 }
  0x30   :  { %p1042_p9 = pnand %p1041_p8, %p1035_p5 }
  0x32   :  { %1045 = shalt.err (!%p1042_p9)
}
  0x33   :  { %s1079_s0 = smov 16   ;;  %s1080_s21 = smov 1  }
  0x34   :  { %44 = dma.hbm_to_vmem [thread:$0]  %s1205_s2, 80, %s39_s29, [#allocation6], %s1079_s0, %s1079_s0, %s1080_s21  }
  0x35   :  { %1068 = dma.done.wait [#allocation3], 128  }
  0x36   :  { %1069 = vsyncadd [#allocation3], 4294967168 }
  0x37   :  { %1070 = dma.done.wait [#allocation6], 10320  }
  0x38   :  { %1071 = vsyncadd [#allocation6], 4294956976  ;;  %v1081_v0 = vmov 0.0|0.0   ;;  %vm1082_vm0 = vmmov 0   ;;  %v1083_v1 = vmov 0.0   ;;  %v55_v2 = vld [vmem:[#allocation5] sm:$0xff] }
  0x39   :  { %839 = vmatprep.subr.bf16.mxu0 %v1081_v0  ;;  %696 = vmatprep.mubr.msk.f32.mxu0 %vm1082_vm0, %v1083_v1  ;;  %v56_v3 = vld [vmem:[#allocation5 + $0x8] sm:$0xff]  ;;  %v57_v4 = vld [vmem:[#allocation5 + $0x10] sm:$0xff]  ;;  %v58_v6 = vld [vmem:[#allocation5 + $0x18] sm:$0xff]  ;;  %s1084_s2 = smov [#allocation8]  }
  0x3a   :  { %863 = vmatprep.subr.bf16.mxu1 %v1081_v0  ;;  %731 = vmatprep.mubr.msk.f32.mxu1 %vm1082_vm0, %v1083_v1  ;;  %v840_v5 = vpack.c.bf16 %v56_v3, %v55_v2  ;;  %v843_v7 = vpack.c.bf16 %v58_v6, %v57_v4  ;;  %v59_v8 = vld [vmem:[#allocation5 + $0x20] sm:$0xff]  ;;  %v60_v9 = vld [vmem:[#allocation5 + $0x28] sm:$0xff]  ;;  %v157_v12 = vld [vmem:[#allocation5 + $0x90] sm:$0xff]  ;;  %s564_s24 = sshll.u32 %s1084_s2, 4  ;;  %s565_s24 = int_to_ptr.vmem [resolvable:$true] %s564_s24 }
  0x3b   :  { %v155_v10 = vld [vmem:[#allocation5 + $0x80] sm:$0xff]  ;;  %v156_v11 = vld [vmem:[#allocation5 + $0x88] sm:$0xff]  ;;  %v158_v13 = vld [vmem:[#allocation5 + $0x98] sm:$0xff]  ;;  %v846_v14 = vpack.c.bf16 %v60_v9, %v59_v8  ;;  %s1046_s25 = scalar_lea.vmem %s565_s24, 128  ;;  %p1051_p11 = scmp.lt.s32.totalorder %s565_s24, %s565_s24 }
  0x3c   :  { %841 = vmatpush3.bf16.msra.mxu0 %v840_v5  ;;  %v864_v15 = vpack.c.bf16 %v156_v11, %v155_v10  ;;  %v61_v16 = vld [vmem:[#allocation5 + $0x30] sm:$0xff]  ;;  %v62_v17 = vld [vmem:[#allocation5 + $0x38] sm:$0xff]  ;;  %v867_v18 = vpack.c.bf16 %v158_v13, %v157_v12  ;;  %v159_v19 = vld [vmem:[#allocation5 + $0xa0] sm:$0xff]  ;;  %p1047_p10 = scmp.ne.s32.totalorder %s565_s24, %s1046_s25  ;;  %p1052_p12 = scmp.lt.s32.totalorder %s1046_s25, %s1046_s25 }
  0x3d   :  { %842 = vmatprep.subr.bf16.mxu0 %v1081_v0  ;;  %v160_v20 = vld [vmem:[#allocation5 + $0xa8] sm:$0xff]  ;;  %v849_v21 = vpack.c.bf16 %v62_v17, %v61_v16  ;;  %v63_v22 = vld [vmem:[#allocation5 + $0x40] sm:$0xff]  ;;  %v65_v26 = vld [vmem:[#allocation5 + $0x50] sm:$0xff] }
  0x3e   :  { %865 = vmatpush3.bf16.msra.mxu1 %v864_v15  ;;  %v64_v23 = vld [vmem:[#allocation5 + $0x48] sm:$0xff]  ;;  %v870_v24 = vpack.c.bf16 %v160_v20, %v159_v19  ;;  %v66_v27 = vld [vmem:[#allocation5 + $0x58] sm:$0xff]  ;;  %v67_v29 = vld [vmem:[#allocation5 + $0x60] sm:$0xff]  ;;  %p1053_p13 = por %p1052_p12, %p1051_p11 }
  0x3f   :  { %866 = vmatprep.subr.bf16.mxu1 %v1081_v0  ;;  %v852_v25 = vpack.c.bf16 %v64_v23, %v63_v22  ;;  %v855_v28 = vpack.c.bf16 %v66_v27, %v65_v26  ;;  %v68_v30 = vld [vmem:[#allocation5 + $0x68] sm:$0xff]  ;;  %v69_v32 = vld [vmem:[#allocation5 + $0x70] sm:$0xff]  ;;  %v70_v33 = vld [vmem:[#allocation5 + $0x78] sm:$0xff] }
  0x40   :  { %844 = vmatpush3.bf16.msra.mxu0 %v843_v7  ;;  %v858_v31 = vpack.c.bf16 %v68_v30, %v67_v29  ;;  %v861_v34 = vpack.c.bf16 %v70_v33, %v69_v32  ;;  %v54_v35 = vld [vmem:[#allocation2] sm:$0xff]  ;;  %v161_v36 = vld [vmem:[#allocation5 + $0xb0] sm:$0xff]  ;;  %v163_v39 = vld [vmem:[#allocation5 + $0xc0] sm:$0xff]  ;;  %p1054_p0 = pnand %p1053_p13, %p1047_p10 }
  0x41   :  { %845 = vmatprep.subr.bf16.mxu0 %v1081_v0  ;;  %v162_v37 = vld [vmem:[#allocation5 + $0xb8] sm:$0xff]  ;;  %v164_v40 = vld [vmem:[#allocation5 + $0xc8] sm:$0xff]  ;;  %v165_v42 = vld [vmem:[#allocation5 + $0xd0] sm:$0xff] }
  0x42   :  { %868 = vmatpush3.bf16.msra.mxu1 %v867_v18  ;;  %v873_v38 = vpack.c.bf16 %v162_v37, %v161_v36  ;;  %v876_v41 = vpack.c.bf16 %v164_v40, %v163_v39  ;;  %v166_v43 = vld [vmem:[#allocation5 + $0xd8] sm:$0xff]  ;;  %v167_v45 = vld [vmem:[#allocation5 + $0xe0] sm:$0xff]  ;;  %v168_v46 = vld [vmem:[#allocation5 + $0xe8] sm:$0xff] }
  0x43   :  { %869 = vmatprep.subr.bf16.mxu1 %v1081_v0  ;;  %v879_v44 = vpack.c.bf16 %v166_v43, %v165_v42  ;;  %v882_v47 = vpack.c.bf16 %v168_v46, %v167_v45  ;;  %v169_v48 = vld [vmem:[#allocation5 + $0xf0] sm:$0xff]  ;;  %v170_v49 = vld [vmem:[#allocation5 + $0xf8] sm:$0xff]  ;;  %v256_v51 = vld [vmem:[#allocation5 + $0x100] sm:$0xff] }
  0x44   :  { %847 = vmatpush3.bf16.msra.mxu0 %v846_v14  ;;  %v885_v50 = vpack.c.bf16 %v170_v49, %v169_v48  ;;  %v257_v52 = vld [vmem:[#allocation5 + $0x108] sm:$0xff]  ;;  %v258_v53 = vld [vmem:[#allocation5 + $0x110] sm:$0xff]  ;;  %v259_v55 = vld [vmem:[#allocation5 + $0x118] sm:$0xff] }
  0x45   :  { %848 = vmatprep.subr.bf16.mxu0 %v1081_v0  ;;  %v888_v54 = vpack.c.bf16 %v257_v52, %v256_v51  ;;  %v891_v56 = vpack.c.bf16 %v259_v55, %v258_v53  ;;  %v260_v57 = vld [vmem:[#allocation5 + $0x120] sm:$0xff]  ;;  %v261_v58 = vld [vmem:[#allocation5 + $0x128] sm:$0xff]  ;;  %v262_v8 = vld [vmem:[#allocation5 + $0x130] sm:$0xff] }
  0x46   :  { %871 = vmatpush3.bf16.msra.mxu1 %v870_v24  ;;  %v894_v59 = vpack.c.bf16 %v261_v58, %v260_v57  ;;  %v574_v60 = vld [vmem:[#allocation7] ss:$0 sm:$0xff]  ;;  %v263_v9 = vld [vmem:[#allocation5 + $0x138] sm:$0xff]  ;;  %v265_v12 = vld [vmem:[#allocation5 + $0x148] sm:$0xff] }
  0x47   :  { %872 = vmatprep.subr.bf16.mxu1 %v1081_v0  ;;  %v897_v10 = vpack.c.bf16 %v263_v9, %v262_v8  ;;  %v264_v11 = vld [vmem:[#allocation5 + $0x140] sm:$0xff]  ;;  %v266_v14 = vld [vmem:[#allocation5 + $0x150] sm:$0xff]  ;;  %v267_v15 = vld [vmem:[#allocation5 + $0x158] sm:$0xff] }
  0x48   :  { %850 = vmatpush3.bf16.msra.mxu0 %v849_v21  ;;  %v900_v13 = vpack.c.bf16 %v265_v12, %v264_v11  ;;  %v903_v16 = vpack.c.bf16 %v267_v15, %v266_v14  ;;  %v268_v17 = vld [vmem:[#allocation5 + $0x160] sm:$0xff]  ;;  %v269_v18 = vld [vmem:[#allocation5 + $0x168] sm:$0xff]  ;;  %v270_v20 = vld [vmem:[#allocation5 + $0x170] sm:$0xff] }
  0x49   :  { %851 = vmatprep.subr.bf16.mxu0 %v1081_v0  ;;  %v906_v19 = vpack.c.bf16 %v269_v18, %v268_v17  ;;  %v271_v21 = vld [vmem:[#allocation5 + $0x178] sm:$0xff]  ;;  %v357_v23 = vld [vmem:[#allocation5 + $0x180] sm:$0xff]  ;;  %v358_v24 = vld [vmem:[#allocation5 + $0x188] sm:$0xff] }
  0x4a   :  { %874 = vmatpush3.bf16.msra.mxu1 %v873_v38  ;;  %v909_v22 = vpack.c.bf16 %v271_v21, %v270_v20  ;;  %v912_v26 = vpack.c.bf16 %v358_v24, %v357_v23  ;;  %v360_v27 = vld [vmem:[#allocation5 + $0x198] sm:$0xff]  ;;  %v361_v29 = vld [vmem:[#allocation5 + $0x1a0] sm:$0xff]  ;;  %v362_v30 = vld [vmem:[#allocation5 + $0x1a8] sm:$0xff] }
  0x4b   :  { %875 = vmatprep.subr.bf16.mxu1 %v1081_v0  ;;  %v575_v32 = vld [vmem:[#allocation7 + $0x1] ss:$0 sm:$0xff]  ;;  %v363_v42 = vld [vmem:[#allocation5 + $0x1b0] sm:$0xff]  ;;  %v364_v43 = vld [vmem:[#allocation5 + $0x1b8] sm:$0xff] }
  0x4c   :  { %853 = vmatpush3.bf16.msra.mxu0 %v852_v25  ;;  %v359_v25 = vld [vmem:[#allocation5 + $0x190] sm:$0xff]  ;;  %v365_v45 = vld [vmem:[#allocation5 + $0x1c0] sm:$0xff]  ;;  %v366_v46 = vld [vmem:[#allocation5 + $0x1c8] sm:$0xff] }
  0x4d   :  { %854 = vmatprep.subr.bf16.mxu0 %v1081_v0  ;;  %v367_v48 = vld [vmem:[#allocation5 + $0x1d0] sm:$0xff]  ;;  %v368_v49 = vld [vmem:[#allocation5 + $0x1d8] sm:$0xff]  ;;  %v369_v51 = vld [vmem:[#allocation5 + $0x1e0] sm:$0xff] }
  0x4e   :  { %877 = vmatpush3.bf16.msra.mxu1 %v876_v41  ;;  %v371_v53 = vld [vmem:[#allocation5 + $0x1f0] sm:$0xff]  ;;  %v459_v57 = vld [vmem:[#allocation5 + $0x208] sm:$0xff]  ;;  %v465_v14 = vld [vmem:[#allocation5 + $0x238] sm:$0xff] }
  0x4f   :  { %878 = vmatprep.subr.bf16.mxu1 %v1081_v0  ;;  %v460_v58 = vld [vmem:[#allocation5 + $0x210] sm:$0xff]  ;;  %v467_v17 = vld [vmem:[#allocation5 + $0x248] sm:$0xff]  ;;  %v469_v20 = vld [vmem:[#allocation5 + $0x258] sm:$0xff] }
  0x50   :  { %856 = vmatpush3.bf16.msra.mxu0 %v855_v28  ;;  %v915_v28 = vpack.c.bf16 %v360_v27, %v359_v25  ;;  %v471_v23 = vld [vmem:[#allocation5 + $0x268] sm:$0xff]  ;;  %v472_v25 = vld [vmem:[#allocation5 + $0x270] sm:$0xff] }
  0x51   :  { %857 = vmatprep.subr.bf16.mxu0 %v1081_v0 }
  0x52   :  { %880 = vmatpush3.bf16.msra.mxu1 %v879_v44  ;;  %v921_v44 = vpack.c.bf16 %v364_v43, %v363_v42 }
  0x53   :  { %881 = vmatprep.subr.bf16.mxu1 %v1081_v0 }
  0x54   :  { %859 = vmatpush3.bf16.msra.mxu0 %v858_v31  ;;  %v918_v31 = vpack.c.bf16 %v362_v30, %v361_v29 }
  0x55   :  { %860 = vmatprep.subr.bf16.mxu0 %v1081_v0 }
  0x56   :  { %883 = vmatpush3.bf16.msra.mxu1 %v882_v47  ;;  %v924_v47 = vpack.c.bf16 %v366_v46, %v365_v45 }
  0x57   :  { %884 = vmatprep.subr.bf16.mxu1 %v1081_v0 }
  0x58   :  { %862 = vmatpush3.bf16.msra.mxu0 %v861_v34 }
  0x59   :  { %887 = vmatprep.subr.bf16.mxu0 %v1081_v0 }
  0x5a   :  { %886 = vmatpush3.bf16.msra.mxu1 %v885_v50  ;;  %v927_v50 = vpack.c.bf16 %v368_v49, %v367_v48 }
  0x5b   :  { %697 = vmatmul.mubr.f32.vlgmr.msra.gmra.mrb[0].mxu0 %v54_v35  ;;  %911 = vmatprep.subr.bf16.mxu1 %v1081_v0 }
  0x5c   :  { %766 = vmatprep.mubr.msk.f32.mxu0 %vm1082_vm0, %v1083_v1  ;;  %889 = vmatpush3.bf16.msra.mxu0 %v888_v54  ;;  %v372_v54 = vld [vmem:[#allocation5 + $0x1f8] sm:$0xff] }
  0x5d   :  { %890 = vmatprep.subr.bf16.mxu0 %v1081_v0  ;;  %v933_v55 = vpack.c.bf16 %v372_v54, %v371_v53 }
  0x60   :  { %892 = vmatpush3.bf16.msra.mxu0 %v891_v56  ;;  %v458_v56 = vld [vmem:[#allocation5 + $0x200] sm:$0xff] }
  0x61   :  { %893 = vmatprep.subr.bf16.mxu0 %v1081_v0 }
  0x64   :  { %895 = vmatpush3.bf16.msra.mxu0 %v894_v59  ;;  %v936_v59 = vpack.c.bf16 %v459_v57, %v458_v56 }
  0x65   :  { %896 = vmatprep.subr.bf16.mxu0 %v1081_v0 }
  0x68   :  { %898 = vmatpush3.bf16.msra.mxu0 %v897_v10 }
  0x69   :  { %899 = vmatprep.subr.bf16.mxu0 %v1081_v0 }
  0x6c   :  { %901 = vmatpush3.bf16.msra.mxu0 %v900_v13  ;;  %v464_v13 = vld [vmem:[#allocation5 + $0x230] sm:$0xff] }
  0x6d   :  { %902 = vmatprep.subr.bf16.mxu0 %v1081_v0  ;;  %v945_v15 = vpack.c.bf16 %v465_v14, %v464_v13 }
  0x70   :  { %904 = vmatpush3.bf16.msra.mxu0 %v903_v16  ;;  %v466_v16 = vld [vmem:[#allocation5 + $0x240] sm:$0xff] }
  0x71   :  { %905 = vmatprep.subr.bf16.mxu0 %v1081_v0  ;;  %v948_v18 = vpack.c.bf16 %v467_v17, %v466_v16 }
  0x74   :  { %907 = vmatpush3.bf16.msra.mxu0 %v906_v19  ;;  %v468_v19 = vld [vmem:[#allocation5 + $0x250] sm:$0xff] }
  0x75   :  { %908 = vmatprep.subr.bf16.mxu0 %v1081_v0  ;;  %v951_v21 = vpack.c.bf16 %v469_v20, %v468_v19 }
  0x78   :  { %910 = vmatpush3.bf16.msra.mxu0 %v909_v22  ;;  %v470_v22 = vld [vmem:[#allocation5 + $0x260] sm:$0xff] }
  0x79   :  { %935 = vmatprep.subr.bf16.mxu0 %v1081_v0  ;;  %v954_v24 = vpack.c.bf16 %v471_v23, %v470_v22 }
 0x12e   :  { %v144_v61 = vpop.f32.mrb[0].mxu0 }
 0x12f   :  { %v145_v62 = vadd.f32 %v574_v60, %v144_v61  ;;  %v698_v63 = vpop.f32.mrb[1].mxu0  ;;  %v461_v60 = vld [vmem:[#allocation5 + $0x218] sm:$0xff] }
 0x130   :  { %v939_v61 = vpack.c.bf16 %v461_v60, %v460_v58  ;;  %v463_v63 = vld [vmem:[#allocation5 + $0x228] sm:$0xff] }
 0x131   :  { %v149_v2 = vmul.f32 0.70710677, %v145_v62  ;;  %v148_v4 = vmul.f32 0.5, %v145_v62  ;;  %v462_v62 = vld [vmem:[#allocation5 + $0x220] sm:$0xff] }
 0x133   :  { %970 = verf.f32 %v149_v2  ;;  %v942_v2 = vpack.c.bf16 %v463_v63, %v462_v62 }
 0x13d   :  { %v971_v3 = vpop.eup %970 }
 0x13e   :  { %v151_v5 = vadd.f32 1.0, %v971_v3  ;;  %v576_v3 = vld [vmem:[#allocation7 + $0x2] ss:$0 sm:$0xff] }
 0x140   :  { %v152_v6 = vmul.f32 %v151_v5, %v148_v4 }
 0x142   :  { %v153_v7 = vadd.f32 %v152_v6, %v54_v35 }
 0x144   :  { %732 = vmatmul.mubr.f32.vlgmr.msra.gmra.mrb[0].mxu1 %v153_v7 }
 0x145   :  { %801 = vmatprep.mubr.msk.f32.mxu1 %vm1082_vm0, %v1083_v1  ;;  %913 = vmatpush3.bf16.msra.mxu1 %v912_v26  ;;  %v473_v26 = vld [vmem:[#allocation5 + $0x278] sm:$0xff] }
 0x146   :  { %914 = vmatprep.subr.bf16.mxu1 %v1081_v0  ;;  %v957_v27 = vpack.c.bf16 %v473_v26, %v472_v25 }
 0x149   :  { %916 = vmatpush3.bf16.msra.mxu1 %v915_v28  ;;  %v577_v28 = vld [vmem:[#allocation7 + $0x3] ss:$0 sm:$0xff] }
 0x14a   :  { %917 = vmatprep.subr.bf16.mxu1 %v1081_v0 }
 0x14d   :  { %919 = vmatpush3.bf16.msra.mxu1 %v918_v31 }
 0x14e   :  { %920 = vmatprep.subr.bf16.mxu1 %v1081_v0 }
 0x151   :  { %922 = vmatpush3.bf16.msra.mxu1 %v921_v44 }
 0x152   :  { %923 = vmatprep.subr.bf16.mxu1 %v1081_v0 }
 0x155   :  { %925 = vmatpush3.bf16.msra.mxu1 %v924_v47 }
 0x156   :  { %926 = vmatprep.subr.bf16.mxu1 %v1081_v0 }
 0x159   :  { %928 = vmatpush3.bf16.msra.mxu1 %v927_v50 }
 0x15a   :  { %929 = vmatprep.subr.bf16.mxu1 %v1081_v0 }
 0x217   :  { %v245_v33 = vpop.f32.mrb[0].mxu1 }
 0x218   :  { %v246_v34 = vadd.f32 %v575_v32, %v245_v33  ;;  %v733_v35 = vpop.f32.mrb[1].mxu1 }
 0x21a   :  { %v250_v36 = vmul.f32 0.70710677, %v246_v34  ;;  %v249_v38 = vmul.f32 0.5, %v246_v34 }
 0x21c   :  { %972 = verf.f32 %v250_v36 }
 0x226   :  { %v973_v37 = vpop.eup %972 }
 0x227   :  { %v252_v39 = vadd.f32 1.0, %v973_v37 }
 0x229   :  { %v253_v40 = vmul.f32 %v252_v39, %v249_v38  ;;  %v578_v38 = vld [vmem:[#allocation7 + $0x4] ss:$0 sm:$0xff] }
 0x22b   :  { %v254_v41 = vadd.f32 %v253_v40, %v153_v7 }
 0x22d   :  { %767 = vmatmul.mubr.f32.vlgmr.msra.gmra.mrb[2].mxu0 %v254_v41 }
 0x22e   :  { %836 = vmatprep.mubr.msk.f32.mxu0 %vm1082_vm0, %v1083_v1  ;;  %v370_v1 = vld [vmem:[#allocation5 + $0x1e8] sm:$0xff]  ;;  %937 = vmatpush3.bf16.msra.mxu0 %v936_v59 }
 0x22f   :  { %v930_v52 = vpack.c.bf16 %v370_v1, %v369_v51  ;;  %938 = vmatprep.subr.bf16.mxu0 %v1081_v0 }
 0x231   :  { %931 = vmatpush3.bf16.msra.mxu1 %v930_v52 }
 0x232   :  { %932 = vmatprep.subr.bf16.mxu1 %v1081_v0  ;;  %940 = vmatpush3.bf16.msra.mxu0 %v939_v61 }
 0x233   :  { %941 = vmatprep.subr.bf16.mxu0 %v1081_v0 }
 0x235   :  { %934 = vmatpush3.bf16.msra.mxu1 %v933_v55 }
 0x236   :  { %943 = vmatpush3.bf16.msra.mxu0 %v942_v2 }
 0x237   :  { %944 = vmatprep.subr.bf16.mxu0 %v1081_v0 }
 0x23a   :  { %946 = vmatpush3.bf16.msra.mxu0 %v945_v15 }
 0x23b   :  { %947 = vmatprep.subr.bf16.mxu0 %v1081_v0 }
 0x23e   :  { %949 = vmatpush3.bf16.msra.mxu0 %v948_v18 }
 0x23f   :  { %950 = vmatprep.subr.bf16.mxu0 %v1081_v0 }
 0x242   :  { %952 = vmatpush3.bf16.msra.mxu0 %v951_v21 }
 0x243   :  { %953 = vmatprep.subr.bf16.mxu0 %v1081_v0 }
 0x246   :  { %955 = vmatpush3.bf16.msra.mxu0 %v954_v24 }
 0x247   :  { %956 = vmatprep.subr.bf16.mxu0 %v1081_v0 }
 0x24a   :  { %958 = vmatpush3.bf16.msra.mxu0 %v957_v27 }
 0x300   :  { %v346_v4 = vpop.f32.mrb[2].mxu0 }
 0x301   :  { %v347_v5 = vadd.f32 %v576_v3, %v346_v4  ;;  %v768_v6 = vpop.f32.mrb[3].mxu0 }
 0x303   :  { %v351_v7 = vmul.f32 0.70710677, %v347_v5  ;;  %v350_v9 = vmul.f32 0.5, %v347_v5 }
 0x305   :  { %974 = verf.f32 %v351_v7 }
 0x30f   :  { %v975_v8 = vpop.eup %974 }
 0x310   :  { %v353_v10 = vadd.f32 1.0, %v975_v8 }
 0x312   :  { %v354_v11 = vmul.f32 %v353_v10, %v350_v9 }
 0x314   :  { %v355_v12 = vadd.f32 %v354_v11, %v254_v41 }
 0x316   :  { %802 = vmatmul.mubr.f32.vlgmr.msra.gmra.mrb[2].mxu1 %v355_v12 }
 0x3e9   :  { %v447_v29 = vpop.f32.mrb[2].mxu1 }
 0x3ea   :  { %v448_v30 = vadd.f32 %v577_v28, %v447_v29  ;;  %v803_v31 = vpop.f32.mrb[3].mxu1 }
 0x3ec   :  { %v452_v32 = vmul.f32 0.70710677, %v448_v30  ;;  %v451_v34 = vmul.f32 0.5, %v448_v30 }
 0x3ee   :  { %976 = verf.f32 %v452_v32 }
 0x3f8   :  { %v977_v33 = vpop.eup %976 }
 0x3f9   :  { %v454_v35 = vadd.f32 1.0, %v977_v33 }
 0x3fb   :  { %v455_v36 = vmul.f32 %v454_v35, %v451_v34 }
 0x3fd   :  { %v456_v37 = vadd.f32 %v455_v36, %v355_v12 }
 0x3ff   :  { %837 = vmatmul.mubr.f32.vlgmr.msra.gmra.mrb[4].mxu0 %v456_v37 }
 0x4d2   :  { %v548_v39 = vpop.f32.mrb[4].mxu0 }
 0x4d3   :  { %v549_v40 = vadd.f32 %v578_v38, %v548_v39  ;;  %v838_v0 = vpop.f32.mrb[5].mxu0 }
 0x4d5   :  { %v553_v41 = vmul.f32 0.70710677, %v549_v40  ;;  %v552_v43 = vmul.f32 0.5, %v549_v40 }
 0x4d7   :  { %978 = verf.f32 %v553_v41 }
 0x4e1   :  { %v979_v42 = vpop.eup %978 }
 0x4e2   :  { %v555_v44 = vadd.f32 1.0, %v979_v42 }
 0x4e4   :  { %v556_v45 = vmul.f32 %v555_v44, %v552_v43 }
 0x4e6   :  { %557 = vst [vmem:[#allocation8] sm:$0xff] %v556_v45 }
 0x4e7   :  { %1057 = shalt.err (!%p1054_p0)
}
 0x4e8   :  { %s1058_s28 = scalar_lea.hbm %s1206_s3, 128 }
 0x4e9   :  { %p1059_p1 = scmp.ne.s32.totalorder %s1206_s3, %s1058_s28  ;;  %p1062_p2 = scmp.lt.u32.totalorder %s1058_s28, %s1206_s3 }
 0x4eb   :  { %p1064_p3 = pnand %p1062_p2, %p1059_p1 }
 0x4ed   :  { %1067 = shalt.err (!%p1064_p3)
}
 0x4ee   :  { %567 = dma.vmem_to_hbm [thread:$0]  %s565_s24, 128, %s1206_s3, [#allocation4]  }
 0x4ef   :  { %1072 = dma.done.wait [#allocation4], 128  }
 0x4f0   :  { %1073 = vsyncadd [#allocation4], 4294967168 }
 0x4f1   :  { %571 = vsyncpa [#allocation3], 1 }
 0x4f2   :  { %572 = vsyncpa [#allocation6], 1 }
 0x4f3   :  { %573 = vsyncpa [#allocation4], 1 }

</bundles_post_ra>
